<compile_context>
chip_gen: v5e
topology: v5e:2x2
jax: 0.10.0
libtpu: 0.0.40
codegen_flags: <defaults>
</compile_context>

<pallas_src>
import functools

import jax
import jax.numpy as jnp
from jax.experimental import pallas as pl
from jax.experimental.pallas import tpu as pltpu

_LANE = 128


def _round_up(n: int, m: int) -> int:
    return ((n + m - 1) // m) * m


def _cdiv(a: int, b: int) -> int:
    return (a + b - 1) // b


def _pad2(a, rows: int, cols: int):
    r, c = a.shape
    if r == rows and c == cols:
        return a
    return jnp.pad(a, ((0, rows - r), (0, cols - c)))


def _vmem_limit_bytes() -> int:
    """~75% of physical VMEM, capped at 100 MiB (v7x: ~48 MiB; v5e/v6e: ~96 MiB)."""
    try:
        cap = int(getattr(pltpu.get_tpu_info(), "vmem_capacity_bytes",
                          64 * 1024 * 1024))
    except Exception:  # pragma: no cover - non-TPU / interpret backends
        cap = 64 * 1024 * 1024
    return min((cap * 3) // 4, 100 * 1024 * 1024)


# --------------------------------------------------------------------------- #
# Kernel
# --------------------------------------------------------------------------- #
def _phi_cnst_kernel(x_ref, w1_ref, b1_ref, w2_ref, b2_ref, w3_ref, b3_ref,
                     o_ref, *, n_sub: int):
    """Three (tanh -> matmul -> bias) stages on one batch tile, all in VMEM.

    The batch tile is split into `n_sub` statically-unrolled, data-independent
    sub-tiles so the scheduler can overlap one sub-tile's MXU matmul with the
    other's EUP tanh (disjoint VLIW slots).
    """
    compute_dtype = jnp.dtype(w1_ref.dtype)
    # bf16 weights => bf16 tanh (packs 2 elems/lane on v6e/v7x EUP) + bf16 MXU
    # operands; f32 weights => f32 tanh (v5e has no bf16 VPU/EUP) + f32 MXU.
    act_dtype = (jnp.bfloat16 if compute_dtype == jnp.dtype(jnp.bfloat16)
                 else jnp.float32)

    tile_b = o_ref.shape[0]
    sub = tile_b // n_sub

    # Hoist bias loads/casts out of the sub-tile loop (accumulation stays f32).
    b1 = b1_ref[...].astype(jnp.float32)
    b2 = b2_ref[...].astype(jnp.float32)
    b3 = b3_ref[...].astype(jnp.float32)

    for s in range(n_sub):                         # static unroll
        rows = pl.ds(s * sub, sub)

        h = jnp.tanh(x_ref[rows, :].astype(act_dtype))
        h = jnp.dot(h.astype(compute_dtype), w1_ref[...],
                    preferred_element_type=jnp.float32) + b1

        h = jnp.tanh(h.astype(act_dtype))
        h = jnp.dot(h.astype(compute_dtype), w2_ref[...],
                    preferred_element_type=jnp.float32) + b2

        h = jnp.tanh(h.astype(act_dtype))
        h = jnp.dot(h.astype(compute_dtype), w3_ref[...],
                    preferred_element_type=jnp.float32) + b3

        o_ref[rows, :] = h.astype(o_ref.dtype)


# --------------------------------------------------------------------------- #
# Parameter preparation (done ONCE, outside the per-call path)
# --------------------------------------------------------------------------- #
def prepare_params(params, compute_dtype=None):
    """Pad feature dims to lane multiples (exact: tanh(0)=0 and zero weight
    rows/cols contribute exactly 0) and optionally cast to a compute dtype
    (e.g. bf16 for the v6e/v7x MXU/EUP).  Returns (padded_params, out_dim)."""
    w1, b1, w2, b2, w3, b3 = params
    D, H = w1.shape
    O = w3.shape[1]
    D_pad = _round_up(max(D, _LANE), _LANE)
    H_pad = _round_up(max(H, _LANE), _LANE)
    O_pad = _round_up(max(O, _LANE), _LANE)

    def prep(a, rows, cols):
        a = jnp.asarray(a)
        if a.ndim == 1:
            a = a.reshape(1, -1)
        a = _pad2(a, rows, cols)
        if compute_dtype is not None:
            a = a.astype(compute_dtype)
        return a

    padded = (
        prep(w1, D_pad, H_pad), prep(b1, 1, H_pad),
        prep(w2, H_pad, H_pad), prep(b2, 1, H_pad),
        prep(w3, H_pad, O_pad), prep(b3, 1, O_pad),
    )
    return padded, O


# --------------------------------------------------------------------------- #
# Pallas wrapper
# --------------------------------------------------------------------------- #
@functools.partial(jax.jit, static_argnames=("out_dim", "tile_b_max"))
def phi_cnst_params_forward(p, x, padded_params, out_dim, *,
                            tile_b_max: int = 256):
    """Pallas forward. `padded_params` must come from `prepare_params`.
    `p` is ignored (matches the p-independent PyTorch forward)."""
    del p
    w1_p, b1_p, w2_p, b2_p, w3_p, b3_p = padded_params
    B, D = x.shape
    D_pad, H_pad = w1_p.shape
    O_pad = w3_p.shape[1]

    # Feature/K padding of x is required for correctness (explicit zeros);
    # skipped when already lane-aligned.  The batch dim is NOT padded: the
    # grid uses a partial last block (rows are independent; out-of-range rows
    # are clipped at writeback).
    x_p = x if D == D_pad else _pad2(x, B, D_pad)

    # Balanced, sublane-aligned batch tiles.
    sublane = 16 if jnp.dtype(x.dtype) == jnp.dtype(jnp.bfloat16) else 8
    n_tiles = max(1, _cdiv(B, tile_b_max))
    tile_b = _round_up(_cdiv(B, n_tiles), 2 * sublane)
    tile_b = min(tile_b, _round_up(B, sublane))
    n_tiles = _cdiv(B, tile_b)
    # 2 sub-tiles per grid step when each half stays sublane-aligned.
    n_sub = 2 if (tile_b >= 2 * sublane and tile_b % (2 * sublane) == 0) else 1

    # Weights/biases: constant index_map -> VMEM-resident across all steps.
    resident = lambda a: pl.BlockSpec(a.shape, lambda i: (0, 0))
    # TODO(synk): for very large dim on v7x (64 MiB VMEM), single-buffer these
    # constant-index weight specs (pipeline_mode=pl.Buffered(1)) or add a K
    # grid axis for w2 before shrinking tile_b.

    x_item = jnp.dtype(x.dtype).itemsize
    w_item = jnp.dtype(w1_p.dtype).itemsize
    b_work = n_tiles * tile_b
    flops = 2 * b_work * (D_pad * H_pad + H_pad * H_pad + H_pad * O_pad)
    transcendentals = b_work * (D_pad + 2 * H_pad)
    bytes_accessed = (
        x_item * (B * D_pad + B * O_pad)
        + w_item * (D_pad * H_pad + H_pad * H_pad + H_pad * O_pad
                    + 2 * H_pad + O_pad))

    out = pl.pallas_call(
        functools.partial(_phi_cnst_kernel, n_sub=n_sub),
        out_shape=jax.ShapeDtypeStruct((B, O_pad), x.dtype),
        grid_spec=pltpu.PrefetchScalarGridSpec(
            num_scalar_prefetch=0,
            grid=(n_tiles,),
            in_specs=[
                pl.BlockSpec((tile_b, D_pad), lambda i: (i, 0)),   # x tile
                resident(w1_p), resident(b1_p),
                resident(w2_p), resident(b2_p),
                resident(w3_p), resident(b3_p),
            ],
            out_specs=pl.BlockSpec((tile_b, O_pad), lambda i: (i, 0)),
        ),
        compiler_params=pltpu.CompilerParams(
            dimension_semantics=("parallel",),      # megacore shard on v7x
            vmem_limit_bytes=_vmem_limit_bytes(),
        ),
        cost_estimate=pl.CostEstimate(
            flops=flops,
            transcendentals=transcendentals,
            bytes_accessed=bytes_accessed,
        ),
    )(x_p, w1_p, b1_p, w2_p, b2_p, w3_p, b3_p)

    return out if out_dim == O_pad else out[:, :out_dim]


def phi_cnst_params_apply(p, x, params, prepared=None, *, tile_b_max: int = 256,
                          min_pallas_elems: int = 64 * 128):
    """Convenience dispatch: tiny problems (padding waste + launch overhead
    dominate) go to plain XLA; everything else to the Pallas kernel."""
    B = x.shape[0]
    H = params[0].shape[1]
    if B * H < min_pallas_elems:
        return reference_forward(p, x, params)
    if prepared is None:
        prepared = prepare_params(params)
    padded, out_dim = prepared
    return phi_cnst_params_forward(p, x, padded, out_dim=out_dim,
                                   tile_b_max=tile_b_max)


# --------------------------------------------------------------------------- #
# Params / reference
# --------------------------------------------------------------------------- #
def init_params(key, dim, mult, dtype=jnp.float32):
    """Deterministic parameter init. Weights stored as [in, out] (= torch W.T)."""
    d1_in, d1_out = dim, mult * dim          # single_layers
    d2_in, d2_out = mult * dim, mult * dim   # double_layers
    d3_in, d3_out = mult * dim, dim          # triple_layers
    ks = jax.random.split(key, 6)
    scale = lambda fan_in: 1.0 / jnp.sqrt(jnp.asarray(fan_in, dtype))
    w1 = jax.random.uniform(ks[0], (d1_in, d1_out), dtype, -1, 1) * scale(d1_in)
    b1 = jax.random.uniform(ks[1], (1, d1_out), dtype, -1, 1) * scale(d1_in)
    w2 = jax.random.uniform(ks[2], (d2_in, d2_out), dtype, -1, 1) * scale(d2_in)
    b2 = jax.random.uniform(ks[3], (1, d2_out), dtype, -1, 1) * scale(d2_in)
    w3 = jax.random.uniform(ks[4], (d3_in, d3_out), dtype, -1, 1) * scale(d3_in)
    b3 = jax.random.uniform(ks[5], (1, d3_out), dtype, -1, 1) * scale(d3_in)
    return (w1, b1, w2, b2, w3, b3)


def reference_forward(p, x, params):
    del p  # TODO(synk): self.num_evals counter is Python-side mutable state, kept outside the kernel.
    w1, b1, w2, b2, w3, b3 = params
    h = jnp.tanh(x)
    h = h @ w1 + b1
    h = jnp.tanh(h)
    h = h @ w2 + b2
    h = jnp.tanh(h)
    h = h @ w3 + b3
    return h


# --------------------------------------------------------------------------- #
# Main
# --------------------------------------------------------------------------- #
if __name__ == "__main__":
    key = jax.random.PRNGKey(0)
    k1, k2, k3, k4, k5, k6 = jax.random.split(key, 6)

    # ---- Case 1: tiny deployment-ish shape, forced through the Pallas path --
    dim, mult, batch = 32, 2, 8
    x1 = jax.random.normal(k1, (batch, dim), jnp.float32)
    p1 = jax.random.normal(k2, (batch, dim), jnp.float32)   # unused (p-independent)
    params1 = init_params(k3, dim, mult)
    padded1, o1 = prepare_params(params1)
    out1 = jax.block_until_ready(
        phi_cnst_params_forward(p1, x1, padded1, out_dim=o1))
    ref1 = reference_forward(p1, x1, params1)
    assert out1.shape == (batch, dim)
    assert jnp.allclose(out1, ref1, atol=1e-5, rtol=1e-5)

    # ---- Case 2: larger batch — exercises partial last grid block + feature
    #      padding of x / output slice (D=64 -> 128, O=64 -> 128) -------------
    dim2, mult2, batch2 = 64, 2, 300
    x2 = jax.random.normal(k4, (batch2, dim2), jnp.float32)
    p2 = jax.random.normal(k5, (batch2, dim2), jnp.float32)
    params2 = init_params(k6, dim2, mult2)
    padded2, o2 = prepare_params(params2)
    out2 = jax.block_until_ready(
        phi_cnst_params_forward(p2, x2, padded2, out_dim=o2))
    ref2 = reference_forward(p2, x2, params2)
    assert out2.shape == (batch2, dim2)
    assert jnp.allclose(out2, ref2, atol=5e-4, rtol=5e-4)

    # ---- Case 3: bf16 compute path (v6e/v7x MXU/EUP-friendly operands) ------
    padded2_bf16, _ = prepare_params(params2, compute_dtype=jnp.bfloat16)
    out3 = jax.block_until_ready(
        phi_cnst_params_forward(p2, x2, padded2_bf16, out_dim=o2))
    params2_q = tuple(a.astype(jnp.bfloat16).astype(jnp.float32)
                      for a in params2)
    ref3 = reference_forward(p2, x2, params2_q)
    assert out3.shape == (batch2, dim2)
    assert float(jnp.max(jnp.abs(out3 - ref3))) < 0.15

    print("KERNEL_OK")
</pallas_src>

<mosaic_0001>
module attributes {stable_mosaic.version = 11 : i64} {
  func.func @_phi_cnst_kernel(%arg0: i32, %arg1: memref<8x128xf32, #tpu.memory_space<vmem>>, %arg2: memref<128x128xf32, #tpu.memory_space<vmem>>, %arg3: memref<1x128xf32, #tpu.memory_space<vmem>>, %arg4: memref<128x128xf32, #tpu.memory_space<vmem>>, %arg5: memref<1x128xf32, #tpu.memory_space<vmem>>, %arg6: memref<128x128xf32, #tpu.memory_space<vmem>>, %arg7: memref<1x128xf32, #tpu.memory_space<vmem>>, %arg8: memref<8x128xf32, #tpu.memory_space<vmem>>) attributes {dimension_semantics = [#tpu.dimension_semantics<parallel>], iteration_bounds = array<i64: 1>, scalar_prefetch = 0 : i64, scratch_operands = 0 : i64, tpu.core_type = #tpu.core_type<tc>, window_params = [{transform_indices = @transform_0, window_bounds = array<i64: 8, 128>}, {pipeline_mode = #tpu.pipeline_mode<synchronous>, transform_indices = @transform_1, window_bounds = array<i64: 128, 128>}, {pipeline_mode = #tpu.pipeline_mode<synchronous>, transform_indices = @transform_2, window_bounds = array<i64: 1, 128>}, {pipeline_mode = #tpu.pipeline_mode<synchronous>, transform_indices = @transform_3, window_bounds = array<i64: 128, 128>}, {pipeline_mode = #tpu.pipeline_mode<synchronous>, transform_indices = @transform_4, window_bounds = array<i64: 1, 128>}, {pipeline_mode = #tpu.pipeline_mode<synchronous>, transform_indices = @transform_5, window_bounds = array<i64: 128, 128>}, {pipeline_mode = #tpu.pipeline_mode<synchronous>, transform_indices = @transform_6, window_bounds = array<i64: 1, 128>}, {transform_indices = @transform_7, window_bounds = array<i64: 8, 128>}]} {
    %c0 = arith.constant 0 : index
    %c0_0 = arith.constant 0 : index
    %0 = vector.load %arg3[%c0, %c0_0] : memref<1x128xf32, #tpu.memory_space<vmem>>, vector<1x128xf32>
    %c0_1 = arith.constant 0 : index
    %c0_2 = arith.constant 0 : index
    %1 = vector.load %arg5[%c0_1, %c0_2] : memref<1x128xf32, #tpu.memory_space<vmem>>, vector<1x128xf32>
    %c0_3 = arith.constant 0 : index
    %c0_4 = arith.constant 0 : index
    %2 = vector.load %arg7[%c0_3, %c0_4] : memref<1x128xf32, #tpu.memory_space<vmem>>, vector<1x128xf32>
    %c0_5 = arith.constant 0 : index
    %c0_6 = arith.constant 0 : index
    %3 = vector.load %arg1[%c0_5, %c0_6] : memref<8x128xf32, #tpu.memory_space<vmem>>, vector<8x128xf32>
    %4 = math.tanh %3 : vector<8x128xf32>
    %c0_7 = arith.constant 0 : index
    %c0_8 = arith.constant 0 : index
    %5 = vector.load %arg2[%c0_7, %c0_8] : memref<128x128xf32, #tpu.memory_space<vmem>>, vector<128x128xf32>
    %cst = arith.constant dense<0.000000e+00> : vector<8x128xf32>
    %6 = tpu.matmul %4, %5, %cst {dimension_numbers = #tpu.dot_dimension_numbers<[1], [0], [0], [1], [0, 0, 1, 1], [], []>} : vector<8x128xf32>, vector<128x128xf32>, vector<8x128xf32> -> vector<8x128xf32>
    %7 = vector.broadcast %0 : vector<1x128xf32> to vector<8x128xf32>
    %8 = arith.addf %6, %7 : vector<8x128xf32>
    %9 = math.tanh %8 : vector<8x128xf32>
    %c0_9 = arith.constant 0 : index
    %c0_10 = arith.constant 0 : index
    %10 = vector.load %arg4[%c0_9, %c0_10] : memref<128x128xf32, #tpu.memory_space<vmem>>, vector<128x128xf32>
    %cst_11 = arith.constant dense<0.000000e+00> : vector<8x128xf32>
    %11 = tpu.matmul %9, %10, %cst_11 {dimension_numbers = #tpu.dot_dimension_numbers<[1], [0], [0], [1], [0, 0, 1, 1], [], []>} : vector<8x128xf32>, vector<128x128xf32>, vector<8x128xf32> -> vector<8x128xf32>
    %12 = vector.broadcast %1 : vector<1x128xf32> to vector<8x128xf32>
    %13 = arith.addf %11, %12 : vector<8x128xf32>
    %14 = math.tanh %13 : vector<8x128xf32>
    %c0_12 = arith.constant 0 : index
    %c0_13 = arith.constant 0 : index
    %15 = vector.load %arg6[%c0_12, %c0_13] : memref<128x128xf32, #tpu.memory_space<vmem>>, vector<128x128xf32>
    %cst_14 = arith.constant dense<0.000000e+00> : vector<8x128xf32>
    %16 = tpu.matmul %14, %15, %cst_14 {dimension_numbers = #tpu.dot_dimension_numbers<[1], [0], [0], [1], [0, 0, 1, 1], [], []>} : vector<8x128xf32>, vector<128x128xf32>, vector<8x128xf32> -> vector<8x128xf32>
    %17 = vector.broadcast %2 : vector<1x128xf32> to vector<8x128xf32>
    %18 = arith.addf %16, %17 : vector<8x128xf32>
    %c0_15 = arith.constant 0 : index
    %c0_16 = arith.constant 0 : index
    %19 = vector.load %arg8[%c0_15, %c0_16] : memref<8x128xf32, #tpu.memory_space<vmem>>, vector<8x128xf32>
    tpu.vector_store %arg8[%c0_15, %c0_16], %18 {strides = array<i32>} : memref<8x128xf32, #tpu.memory_space<vmem>>, vector<8x128xf32>,
    return
  }
  func.func @transform_0(%arg0: i32) -> (i32, i32) {
    %c0_i32 = arith.constant 0 : i32
    %c0_i32_0 = arith.constant 0 : i32
    return %arg0, %c0_i32 : i32, i32
  }
  func.func @transform_1(%arg0: i32) -> (i32, i32) {
    %c0_i32 = arith.constant 0 : i32
    %c0_i32_0 = arith.constant 0 : i32
    %c0_i32_1 = arith.constant 0 : i32
    return %c0_i32, %c0_i32_0 : i32, i32
  }
  func.func @transform_2(%arg0: i32) -> (i32, i32) {
    %c0_i32 = arith.constant 0 : i32
    %c0_i32_0 = arith.constant 0 : i32
    %c0_i32_1 = arith.constant 0 : i32
    return %c0_i32, %c0_i32_0 : i32, i32
  }
  func.func @transform_3(%arg0: i32) -> (i32, i32) {
    %c0_i32 = arith.constant 0 : i32
    %c0_i32_0 = arith.constant 0 : i32
    %c0_i32_1 = arith.constant 0 : i32
    return %c0_i32, %c0_i32_0 : i32, i32
  }
  func.func @transform_4(%arg0: i32) -> (i32, i32) {
    %c0_i32 = arith.constant 0 : i32
    %c0_i32_0 = arith.constant 0 : i32
    %c0_i32_1 = arith.constant 0 : i32
    return %c0_i32, %c0_i32_0 : i32, i32
  }
  func.func @transform_5(%arg0: i32) -> (i32, i32) {
    %c0_i32 = arith.constant 0 : i32
    %c0_i32_0 = arith.constant 0 : i32
    %c0_i32_1 = arith.constant 0 : i32
    return %c0_i32, %c0_i32_0 : i32, i32
  }
  func.func @transform_6(%arg0: i32) -> (i32, i32) {
    %c0_i32 = arith.constant 0 : i32
    %c0_i32_0 = arith.constant 0 : i32
    %c0_i32_1 = arith.constant 0 : i32
    return %c0_i32, %c0_i32_0 : i32, i32
  }
  func.func @transform_7(%arg0: i32) -> (i32, i32) {
    %c0_i32 = arith.constant 0 : i32
    %c0_i32_0 = arith.constant 0 : i32
    return %arg0, %c0_i32 : i32, i32
  }
}

</mosaic_0001>

<bundles_post_ra>
// kernel: phi_cnst_params_forward.1
= control target key start
LH: loop header
LB: loop body
LE: loop exit
PB: predicated region body
PF: predicated region fallthrough
CT: control target
= control target key end

     0   :  { %12 = vsyncpa [#allocation3], 0  ;;  %s404_s0 = inlined_call_operand.vmem [shape: f32[8,128], index: 0, kind: input, shape index: {}]   ;;  %s405_s1 = inlined_call_operand.hbm [shape: f32[128,128], index: 1, kind: input, shape index: {}]   ;;  %s406_s2 = inlined_call_operand.vmem [shape: f32[1,128], index: 2, kind: input, shape index: {}]   ;;  %s407_s3 = inlined_call_operand.hbm [shape: f32[128,128], index: 3, kind: input, shape index: {}]   ;;  %s408_s4 = inlined_call_operand.vmem [shape: f32[1,128], index: 4, kind: input, shape index: {}]   ;;  %s409_s5 = inlined_call_operand.hbm [shape: f32[128,128], index: 5, kind: input, shape index: {}]   ;;  %s410_s6 = inlined_call_operand.vmem [shape: f32[1,128], index: 6, kind: input, shape index: {}]   ;;  %s411_s7 = inlined_call_operand.hbm [shape: f32[8,128], index: 7, kind: output, shape index: {}]  }
   0x1   :  { %13 = vsyncpa [#allocation6], 0 }
   0x2   :  { %14 = vsyncpa [#allocation4], 0  ;;  %s36_s26 = sshll.u32 %s407_s3, 4  ;;  %s334_s27 = smov [#allocation5]   ;;  %s37_s26 = int_to_ptr.hbm [resolvable:$true] %s36_s26 }
   0x3   :  { %s38_s28 = sshll.u32 %s334_s27, 4  ;;  %s21_s8 = sshll.u32 %s405_s1, 4  ;;  %s39_s28 = int_to_ptr.vmem [resolvable:$true] %s38_s28  ;;  %s22_s8 = int_to_ptr.hbm [resolvable:$true] %s21_s8 }
   0x4   :  { %s335_s9 = smov 128   ;;  %s336_s10 = smov 8  }
   0x5   :  { %44 = dma.hbm_to_vmem [thread:$0]  %s37_s26, 2048, %s39_s28, [#allocation6], %s335_s9, %s335_s9, %s336_s10  }
   0x6   :  { %s337_s11 = smov [#allocation2]   ;;  %s51_s15 = sshll.u32 %s409_s5, 4  ;;  %s52_s15 = int_to_ptr.hbm [resolvable:$true] %s51_s15 }
   0x7   :  { %s23_s12 = sshll.u32 %s337_s11, 4  ;;  %s338_s3 = smov [#allocation7]   ;;  %s24_s12 = int_to_ptr.vmem [resolvable:$true] %s23_s12 }
   0x8   :  { %29 = dma.hbm_to_vmem [thread:$0]  %s22_s8, 2048, %s24_s12, [#allocation3], %s335_s9, %s335_s9, %s336_s10  }
   0x9   :  { %s53_s16 = sshll.u32 %s338_s3, 4  ;;  %s54_s16 = int_to_ptr.vmem [resolvable:$true] %s53_s16 }
   0xa   :  { %59 = dma.hbm_to_vmem [thread:$0]  %s52_s15, 2048, %s54_s16, [#allocation6], %s335_s9, %s335_s9, %s336_s10  }
   0xb   :  { %328 = dma.done.wait [#allocation3], 2048  }
   0xc   :  { %329 = vsyncadd [#allocation3], 4294965248 }
   0xd   :  { %330 = dma.done.wait [#allocation6], 4096  }
   0xe   :  { %331 = vsyncadd [#allocation6], 4294963200  ;;  %v94_v0 = vld [vmem:[#allocation2 + $0x78] sm:$0xff]  ;;  %v93_v1 = vld [vmem:[#allocation2 + $0x70] sm:$0xff]  ;;  %s339_s21 = smov [#allocation8]   ;;  %s206_s25 = sshll.u32 %s411_s7, 4  ;;  %s207_s25 = int_to_ptr.hbm [resolvable:$true] %s206_s25 }
   0xf   :  { %98 = vmatpush.msra.mxu0 %v94_v0  ;;  %v92_v2 = vld [vmem:[#allocation2 + $0x68] sm:$0xff]  ;;  %v91_v3 = vld [vmem:[#allocation2 + $0x60] sm:$0xff]  ;;  %v134_v4 = vld [vmem:[#allocation5 + $0x78] sm:$0xff]  ;;  %s204_s22 = sshll.u32 %s339_s21, 4  ;;  %s205_s22 = int_to_ptr.vmem [resolvable:$true] %s204_s22 }
  0x10   :  { %v90_v5 = vld [vmem:[#allocation2 + $0x58] sm:$0xff]  ;;  %138 = vmatpush.msra.mxu1 %v134_v4  ;;  %v133_v6 = vld [vmem:[#allocation5 + $0x70] sm:$0xff]  ;;  %v132_v7 = vld [vmem:[#allocation5 + $0x68] sm:$0xff] }
  0x11   :  { %99 = vmatpush.msra.mxu0 %v93_v1  ;;  %v89_v8 = vld [vmem:[#allocation2 + $0x50] sm:$0xff]  ;;  %v131_v9 = vld [vmem:[#allocation5 + $0x60] sm:$0xff]  ;;  %v88_v10 = vld [vmem:[#allocation2 + $0x48] sm:$0xff] }
  0x12   :  { %139 = vmatpush.msra.mxu1 %v133_v6  ;;  %v130_v11 = vld [vmem:[#allocation5 + $0x58] sm:$0xff]  ;;  %v87_v12 = vld [vmem:[#allocation2 + $0x40] sm:$0xff]  ;;  %v129_v13 = vld [vmem:[#allocation5 + $0x50] sm:$0xff] }
  0x13   :  { %100 = vmatpush.msra.mxu0 %v92_v2  ;;  %v86_v14 = vld [vmem:[#allocation2 + $0x38] sm:$0xff]  ;;  %v128_v15 = vld [vmem:[#allocation5 + $0x48] sm:$0xff]  ;;  %v85_v16 = vld [vmem:[#allocation2 + $0x30] sm:$0xff] }
  0x14   :  { %140 = vmatpush.msra.mxu1 %v132_v7  ;;  %v127_v17 = vld [vmem:[#allocation5 + $0x40] sm:$0xff]  ;;  %v84_v18 = vld [vmem:[#allocation2 + $0x28] sm:$0xff]  ;;  %v126_v19 = vld [vmem:[#allocation5 + $0x38] sm:$0xff] }
  0x15   :  { %101 = vmatpush.msra.mxu0 %v91_v3  ;;  %v83_v20 = vld [vmem:[#allocation2 + $0x20] sm:$0xff]  ;;  %v125_v22 = vld [vmem:[#allocation5 + $0x30] sm:$0xff]  ;;  %v82_v23 = vld [vmem:[#allocation2 + $0x18] sm:$0xff] }
  0x16   :  { %141 = vmatpush.msra.mxu1 %v131_v9  ;;  %v77_v21 = vld [vmem:[%s404_s0] sm:$0xff]  ;;  %v124_v24 = vld [vmem:[#allocation5 + $0x28] sm:$0xff]  ;;  %v81_v25 = vld [vmem:[#allocation2 + $0x10] sm:$0xff] }
  0x17   :  { %102 = vmatpush.msra.mxu0 %v90_v5  ;;  %226 = vtanh.f32 %v77_v21  ;;  %v80_v26 = vld [vmem:[#allocation2 + $0x8] sm:$0xff]  ;;  %v79_v27 = vld [vmem:[#allocation2] sm:$0xff]  ;;  %v122_v30 = vld [vmem:[#allocation5 + $0x18] sm:$0xff] }
  0x18   :  { %142 = vmatpush.msra.mxu1 %v130_v11  ;;  %v123_v29 = vld [vmem:[#allocation5 + $0x20] sm:$0xff]  ;;  %v121_v31 = vld [vmem:[#allocation5 + $0x10] sm:$0xff]  ;;  %v120_v32 = vld [vmem:[#allocation5 + $0x8] sm:$0xff] }
  0x19   :  { %103 = vmatpush.msra.mxu0 %v89_v8  ;;  %v119_v33 = vld [vmem:[#allocation5] sm:$0xff]  ;;  %v174_v34 = vld [vmem:[#allocation7 + $0x78] sm:$0xff]  ;;  %v173_v35 = vld [vmem:[#allocation7 + $0x70] sm:$0xff] }
  0x1a   :  { %143 = vmatpush.msra.mxu1 %v129_v13  ;;  %178 = vmatpush.msra.mxu2 %v174_v34  ;;  %v172_v36 = vld [vmem:[#allocation7 + $0x68] sm:$0xff]  ;;  %v171_v37 = vld [vmem:[#allocation7 + $0x60] sm:$0xff]  ;;  %v170_v38 = vld [vmem:[#allocation7 + $0x58] sm:$0xff] }
  0x1b   :  { %104 = vmatpush.msra.mxu0 %v88_v10  ;;  %v169_v39 = vld [vmem:[#allocation7 + $0x50] sm:$0xff]  ;;  %v168_v40 = vld [vmem:[#allocation7 + $0x48] sm:$0xff]  ;;  %v167_v41 = vld [vmem:[#allocation7 + $0x40] sm:$0xff] }
  0x1c   :  { %144 = vmatpush.msra.mxu1 %v128_v15  ;;  %179 = vmatpush.msra.mxu2 %v173_v35  ;;  %v166_v42 = vld [vmem:[#allocation7 + $0x38] sm:$0xff]  ;;  %v165_v43 = vld [vmem:[#allocation7 + $0x30] sm:$0xff]  ;;  %v164_v44 = vld [vmem:[#allocation7 + $0x28] sm:$0xff] }
  0x1d   :  { %105 = vmatpush.msra.mxu0 %v87_v12  ;;  %v227_v28 = vpop.eup %226  ;;  %v223_v45 = vld [vmem:[%s406_s2] ss:$0 sm:$0xff]  ;;  %v162_v50 = vld [vmem:[#allocation7 + $0x18] sm:$0xff]  ;;  %v161_v51 = vld [vmem:[#allocation7 + $0x10] sm:$0xff] }
  0x1e   :  { %145 = vmatpush.msra.mxu1 %v127_v17  ;;  %180 = vmatpush.msra.mxu2 %v172_v36  ;;  %v163_v49 = vld [vmem:[#allocation7 + $0x20] sm:$0xff]  ;;  %v160_v52 = vld [vmem:[#allocation7 + $0x8] sm:$0xff] }
  0x1f   :  { %106 = vmatpush.msra.mxu0 %v86_v14  ;;  %v159_v53 = vld [vmem:[#allocation7] sm:$0xff] }
  0x20   :  { %146 = vmatpush.msra.mxu1 %v126_v19  ;;  %181 = vmatpush.msra.mxu2 %v171_v37  ;;  %v224_v54 = vld [vmem:[%s408_s4] ss:$0 sm:$0xff] }
  0x21   :  { %107 = vmatpush.msra.mxu0 %v85_v16  ;;  %v225_v58 = vld [vmem:[%s410_s6] ss:$0 sm:$0xff] }
  0x22   :  { %147 = vmatpush.msra.mxu1 %v125_v22  ;;  %182 = vmatpush.msra.mxu2 %v170_v38 }
  0x23   :  { %108 = vmatpush.msra.mxu0 %v84_v18 }
  0x24   :  { %148 = vmatpush.msra.mxu1 %v124_v24  ;;  %183 = vmatpush.msra.mxu2 %v169_v39 }
  0x25   :  { %109 = vmatpush.msra.mxu0 %v83_v20 }
  0x26   :  { %149 = vmatpush.msra.mxu1 %v123_v29  ;;  %184 = vmatpush.msra.mxu2 %v168_v40 }
  0x27   :  { %110 = vmatpush.msra.mxu0 %v82_v23 }
  0x28   :  { %150 = vmatpush.msra.mxu1 %v122_v30  ;;  %185 = vmatpush.msra.mxu2 %v167_v41 }
  0x29   :  { %111 = vmatpush.msra.mxu0 %v81_v25 }
  0x2a   :  { %151 = vmatpush.msra.mxu1 %v121_v31  ;;  %186 = vmatpush.msra.mxu2 %v166_v42 }
  0x2b   :  { %112 = vmatpush.msra.mxu0 %v80_v26 }
  0x2c   :  { %152 = vmatpush.msra.mxu1 %v120_v32  ;;  %187 = vmatpush.msra.mxu2 %v165_v43 }
  0x2d   :  { %113 = vmatpush.msra.mxu0 %v79_v27 }
  0x2e   :  { %114 = vmatmul.f32.vlgmr.msra.gmra.mxu0 %v227_v28  ;;  %153 = vmatpush.msra.mxu1 %v119_v33 }
  0x2f   :  { %188 = vmatpush.msra.mxu2 %v164_v44 }
  0x31   :  { %189 = vmatpush.msra.mxu2 %v163_v49 }
  0x33   :  { %190 = vmatpush.msra.mxu2 %v162_v50 }
  0x35   :  { %191 = vmatpush.msra.mxu2 %v161_v51 }
  0x37   :  { %192 = vmatpush.msra.mxu2 %v160_v52 }
  0x39   :  { %193 = vmatpush.msra.mxu2 %v159_v53 }
  0xab   :  { %v115_v46 = vpop.f32.mrf.mxu0 }
  0xac   :  { %v116_v47 = vadd.f32 %v223_v45, %v115_v46 }
  0xae   :  { %228 = vtanh.f32 %v116_v47 }
  0xb4   :  { %v229_v48 = vpop.eup %228 }
  0xb5   :  { %154 = vmatmul.f32.vlgmr.msra.gmra.mxu1 %v229_v48 }
 0x132   :  { %v155_v55 = vpop.f32.mrf.mxu1 }
 0x133   :  { %v156_v56 = vadd.f32 %v224_v54, %v155_v55 }
 0x135   :  { %230 = vtanh.f32 %v156_v56 }
 0x13b   :  { %v231_v57 = vpop.eup %230 }
 0x13c   :  { %194 = vmatmul.f32.vlgmr.msra.gmra.mxu2 %v231_v57 }
 0x1bf   :  { %v195_v59 = vpop.f32.mrf.mxu2 }
 0x1c0   :  { %v196_v60 = vadd.f32 %v225_v58, %v195_v59 }
 0x1c2   :  { %198 = vst [vmem:[#allocation8] sm:$0xff] %v196_v60 }
 0x1c3   :  { %209 = dma.vmem_to_hbm [thread:$0]  %s205_s22, 128, %s207_s25, [#allocation4]  }
 0x1c4   :  { %332 = dma.done.wait [#allocation4], 128  }
 0x1c5   :  { %333 = vsyncadd [#allocation4], 4294967168 }
 0x1c6   :  { %214 = vsyncpa [#allocation3], 1 }
 0x1c7   :  { %215 = vsyncpa [#allocation6], 1 }
 0x1c8   :  { %216 = vsyncpa [#allocation4], 1 }

</bundles_post_ra>
